<compile_context>
chip_gen: v7x
topology: tpu7x:2x2x1
jax: 0.10.0
libtpu: 0.0.40
codegen_flags: <defaults>
</compile_context>

<pallas_src>
import jax
import jax.numpy as jnp
from jax.experimental import pallas as pl
from jax.experimental.pallas import tpu as pltpu

IN_FEATURES = 2
H1, H2, H3 = 12, 8, 4
OUT_FEATURES = 1
OUT_PAD = 128          # lane-dense output width (sliced back to OUT_FEATURES in wrapper)
TILE_B = 256           # batch tile: divisible by 8; double-buffered footprint << VMEM on all gens


def _simplenet_kernel(x_ref, w1_ref, b1_ref, w2_ref, b2_ref,
                      w3_ref, b3_ref, w4_ref, b4_ref, o_ref):
    # layer 1: bf16 x bf16 on the MXU with f32 accumulation; tanh on the f32 path (EUP).
    h = jnp.dot(x_ref[...], w1_ref[...], preferred_element_type=jnp.float32)
    h = jnp.tanh(h + b1_ref[...])
    # layers 2-4: tiny VMEM-resident f32 weights; keep everything f32 (v5e has no bf16 VPU).
    h = jnp.tanh(jnp.dot(h, w2_ref[...], preferred_element_type=jnp.float32) + b2_ref[...])
    h = jnp.tanh(jnp.dot(h, w3_ref[...], preferred_element_type=jnp.float32) + b3_ref[...])
    y = jnp.tanh(jnp.dot(h, w4_ref[...], preferred_element_type=jnp.float32) + b4_ref[...])
    o_ref[...] = y.astype(o_ref.dtype)


def simplenet_forward(x, w1, b1, w2, b2, w3, b3, w4, b4):
    """x: (B, 2). Weights stored as (in_features, out_features), i.e. torch W.T."""
    x2d = x.reshape(-1, IN_FEATURES)
    batch = x2d.shape[0]
    n_tiles = pl.cdiv(batch, TILE_B)
    padded_b = n_tiles * TILE_B

    # Stream x as bf16 (halves HBM bytes of the only big operand); pad batch to a
    # whole number of tiles so the last grid step never touches garbage rows.
    x_bf16 = x2d.astype(jnp.bfloat16)
    if padded_b != batch:
        x_bf16 = jnp.pad(x_bf16, ((0, padded_b - batch), (0, 0)))

    # Lane-dense output: zero-pad last-layer columns to 128.  Padded columns stay
    # exactly 0 (zero weights + zero bias, tanh(0)=0) and are sliced off below.
    w4p = jnp.zeros((H3, OUT_PAD), jnp.float32).at[:, :OUT_FEATURES].set(
        w4.astype(jnp.float32))
    b4p = jnp.zeros((1, OUT_PAD), jnp.float32).at[:, :OUT_FEATURES].set(
        b4.reshape(1, -1).astype(jnp.float32))

    w1_bf = w1.astype(jnp.bfloat16)
    b1_2d = b1.reshape(1, -1).astype(jnp.float32)
    w2_f = w2.astype(jnp.float32)
    b2_2d = b2.reshape(1, -1).astype(jnp.float32)
    w3_f = w3.astype(jnp.float32)
    b3_2d = b3.reshape(1, -1).astype(jnp.float32)

    def resident(shape):  # whole array, constant block index -> stays in VMEM
        return pl.BlockSpec(shape, lambda i: (0, 0))

    cost = pl.CostEstimate(
        flops=2 * padded_b * (IN_FEATURES * H1 + H1 * H2 + H2 * H3 + H3 * OUT_PAD),
        transcendentals=padded_b * (H1 + H2 + H3 + OUT_PAD),
        bytes_accessed=(padded_b * IN_FEATURES * 2              # x (bf16)
                        + padded_b * OUT_PAD * 4                # padded f32 output
                        + IN_FEATURES * H1 * 2                  # w1 (bf16)
                        + (H1 * H2 + H2 * H3 + H3 * OUT_PAD
                           + H1 + H2 + H3 + OUT_PAD) * 4),      # f32 weights/biases
    )

    out_padded = pl.pallas_call(
        _simplenet_kernel,
        out_shape=jax.ShapeDtypeStruct((padded_b, OUT_PAD), jnp.float32),
        grid=(n_tiles,),
        in_specs=[
            pl.BlockSpec((TILE_B, IN_FEATURES), lambda i: (i, 0)),   # streamed x tiles
            resident((IN_FEATURES, H1)), resident((1, H1)),
            resident((H1, H2)), resident((1, H2)),
            resident((H2, H3)), resident((1, H3)),
            resident((H3, OUT_PAD)), resident((1, OUT_PAD)),
        ],
        out_specs=pl.BlockSpec((TILE_B, OUT_PAD), lambda i: (i, 0)),
        compiler_params=pltpu.CompilerParams(
            dimension_semantics=("parallel",),       # v7x: shard batch tiles across TCs
            vmem_limit_bytes=32 * 1024 * 1024,
        ),
        cost_estimate=cost,
    )(x_bf16, w1_bf, b1_2d, w2_f, b2_2d, w3_f, b3_2d, w4p, b4p)

    return out_padded[:batch, :OUT_FEATURES]


def init_params(key):
    """Deterministic init mimicking torch.nn.Linear (uniform +/- 1/sqrt(fan_in)).
    Weights stored as (in_features, out_features)."""
    dims = [IN_FEATURES, H1, H2, H3, OUT_FEATURES]
    keys = jax.random.split(key, 2 * (len(dims) - 1))
    params = []
    for layer, (fan_in, fan_out) in enumerate(zip(dims[:-1], dims[1:])):
        bound = 1.0 / jnp.sqrt(jnp.float32(fan_in))
        w = jax.random.uniform(keys[2 * layer], (fan_in, fan_out),
                               jnp.float32, -bound, bound)
        b = jax.random.uniform(keys[2 * layer + 1], (fan_out,),
                               jnp.float32, -bound, bound)
        params += [w, b]
    return tuple(params)


if __name__ == "__main__":
    key = jax.random.PRNGKey(0)
    kx, kp = jax.random.split(key)
    # Small batch of 2-feature inputs in [-6, 6] (mirrors the script's 100 sample points).
    x = jax.random.uniform(kx, (100, IN_FEATURES), jnp.float32, -6.0, 6.0)
    params = init_params(kp)

    out = simplenet_forward(x, *params)
    out = jax.block_until_ready(out)

    # Plain-JAX reference with the same bf16-rounded first-layer inputs.
    w1, b1, w2, b2, w3, b3, w4, b4 = params
    xr = x.astype(jnp.bfloat16).astype(jnp.float32)
    w1r = w1.astype(jnp.bfloat16).astype(jnp.float32)
    h = jnp.tanh(xr @ w1r + b1)
    h = jnp.tanh(h @ w2 + b2)
    h = jnp.tanh(h @ w3 + b3)
    ref = jnp.tanh(h @ w4 + b4)

    assert out.shape == (100, OUT_FEATURES)
    assert jnp.allclose(out, ref, atol=5e-4, rtol=5e-4)
    print("KERNEL_OK")
</pallas_src>

<mosaic_0001>
module attributes {stable_mosaic.version = 11 : i64} {
  func.func @_simplenet_kernel(%arg0: i32, %arg1: memref<256x2xbf16, #tpu.memory_space<vmem>>, %arg2: memref<2x12xbf16, #tpu.memory_space<vmem>>, %arg3: memref<1x12xf32, #tpu.memory_space<vmem>>, %arg4: memref<12x8xf32, #tpu.memory_space<vmem>>, %arg5: memref<1x8xf32, #tpu.memory_space<vmem>>, %arg6: memref<8x4xf32, #tpu.memory_space<vmem>>, %arg7: memref<1x4xf32, #tpu.memory_space<vmem>>, %arg8: memref<4x128xf32, #tpu.memory_space<vmem>>, %arg9: memref<1x128xf32, #tpu.memory_space<vmem>>, %arg10: memref<256x128xf32, #tpu.memory_space<vmem>>) attributes {dimension_semantics = [#tpu.dimension_semantics<parallel>], iteration_bounds = array<i64: 1>, scalar_prefetch = 0 : i64, scratch_operands = 0 : i64, tpu.core_type = #tpu.core_type<tc>, window_params = [{transform_indices = @transform_0, window_bounds = array<i64: 256, 2>}, {pipeline_mode = #tpu.pipeline_mode<synchronous>, transform_indices = @transform_1, window_bounds = array<i64: 2, 12>}, {pipeline_mode = #tpu.pipeline_mode<synchronous>, transform_indices = @transform_2, window_bounds = array<i64: 1, 12>}, {pipeline_mode = #tpu.pipeline_mode<synchronous>, transform_indices = @transform_3, window_bounds = array<i64: 12, 8>}, {pipeline_mode = #tpu.pipeline_mode<synchronous>, transform_indices = @transform_4, window_bounds = array<i64: 1, 8>}, {pipeline_mode = #tpu.pipeline_mode<synchronous>, transform_indices = @transform_5, window_bounds = array<i64: 8, 4>}, {pipeline_mode = #tpu.pipeline_mode<synchronous>, transform_indices = @transform_6, window_bounds = array<i64: 1, 4>}, {pipeline_mode = #tpu.pipeline_mode<synchronous>, transform_indices = @transform_7, window_bounds = array<i64: 4, 128>}, {pipeline_mode = #tpu.pipeline_mode<synchronous>, transform_indices = @transform_8, window_bounds = array<i64: 1, 128>}, {transform_indices = @transform_9, window_bounds = array<i64: 256, 128>}]} {
    %c0 = arith.constant 0 : index
    %c0_0 = arith.constant 0 : index
    %0 = vector.load %arg1[%c0, %c0_0] : memref<256x2xbf16, #tpu.memory_space<vmem>>, vector<256x2xbf16>
    %c0_1 = arith.constant 0 : index
    %c0_2 = arith.constant 0 : index
    %1 = vector.load %arg2[%c0_1, %c0_2] : memref<2x12xbf16, #tpu.memory_space<vmem>>, vector<2x12xbf16>
    %cst = arith.constant dense<0.000000e+00> : vector<256x12xf32>
    %2 = tpu.matmul %0, %1, %cst {dimension_numbers = #tpu.dot_dimension_numbers<[1], [0], [0], [1], [0, 0, 1, 1], [], []>} : vector<256x2xbf16>, vector<2x12xbf16>, vector<256x12xf32> -> vector<256x12xf32>
    %c0_3 = arith.constant 0 : index
    %c0_4 = arith.constant 0 : index
    %3 = vector.load %arg3[%c0_3, %c0_4] : memref<1x12xf32, #tpu.memory_space<vmem>>, vector<1x12xf32>
    %4 = vector.broadcast %3 : vector<1x12xf32> to vector<256x12xf32>
    %5 = arith.addf %2, %4 : vector<256x12xf32>
    %6 = math.tanh %5 : vector<256x12xf32>
    %c0_5 = arith.constant 0 : index
    %c0_6 = arith.constant 0 : index
    %7 = vector.load %arg4[%c0_5, %c0_6] : memref<12x8xf32, #tpu.memory_space<vmem>>, vector<12x8xf32>
    %cst_7 = arith.constant dense<0.000000e+00> : vector<256x8xf32>
    %8 = tpu.matmul %6, %7, %cst_7 {dimension_numbers = #tpu.dot_dimension_numbers<[1], [0], [0], [1], [0, 0, 1, 1], [], []>} : vector<256x12xf32>, vector<12x8xf32>, vector<256x8xf32> -> vector<256x8xf32>
    %c0_8 = arith.constant 0 : index
    %c0_9 = arith.constant 0 : index
    %9 = vector.load %arg5[%c0_8, %c0_9] : memref<1x8xf32, #tpu.memory_space<vmem>>, vector<1x8xf32>
    %10 = vector.broadcast %9 : vector<1x8xf32> to vector<256x8xf32>
    %11 = arith.addf %8, %10 : vector<256x8xf32>
    %12 = math.tanh %11 : vector<256x8xf32>
    %c0_10 = arith.constant 0 : index
    %c0_11 = arith.constant 0 : index
    %13 = vector.load %arg6[%c0_10, %c0_11] : memref<8x4xf32, #tpu.memory_space<vmem>>, vector<8x4xf32>
    %cst_12 = arith.constant dense<0.000000e+00> : vector<256x4xf32>
    %14 = tpu.matmul %12, %13, %cst_12 {dimension_numbers = #tpu.dot_dimension_numbers<[1], [0], [0], [1], [0, 0, 1, 1], [], []>} : vector<256x8xf32>, vector<8x4xf32>, vector<256x4xf32> -> vector<256x4xf32>
    %c0_13 = arith.constant 0 : index
    %c0_14 = arith.constant 0 : index
    %15 = vector.load %arg7[%c0_13, %c0_14] : memref<1x4xf32, #tpu.memory_space<vmem>>, vector<1x4xf32>
    %16 = vector.broadcast %15 : vector<1x4xf32> to vector<256x4xf32>
    %17 = arith.addf %14, %16 : vector<256x4xf32>
    %18 = math.tanh %17 : vector<256x4xf32>
    %c0_15 = arith.constant 0 : index
    %c0_16 = arith.constant 0 : index
    %19 = vector.load %arg8[%c0_15, %c0_16] : memref<4x128xf32, #tpu.memory_space<vmem>>, vector<4x128xf32>
    %cst_17 = arith.constant dense<0.000000e+00> : vector<256x128xf32>
    %20 = tpu.matmul %18, %19, %cst_17 {dimension_numbers = #tpu.dot_dimension_numbers<[1], [0], [0], [1], [0, 0, 1, 1], [], []>} : vector<256x4xf32>, vector<4x128xf32>, vector<256x128xf32> -> vector<256x128xf32>
    %c0_18 = arith.constant 0 : index
    %c0_19 = arith.constant 0 : index
    %21 = vector.load %arg9[%c0_18, %c0_19] : memref<1x128xf32, #tpu.memory_space<vmem>>, vector<1x128xf32>
    %22 = vector.broadcast %21 : vector<1x128xf32> to vector<256x128xf32>
    %23 = arith.addf %20, %22 : vector<256x128xf32>
    %24 = math.tanh %23 : vector<256x128xf32>
    %c0_20 = arith.constant 0 : index
    %c0_21 = arith.constant 0 : index
    %25 = vector.load %arg10[%c0_20, %c0_21] : memref<256x128xf32, #tpu.memory_space<vmem>>, vector<256x128xf32>
    tpu.vector_store %arg10[%c0_20, %c0_21], %24 {strides = array<i32>} : memref<256x128xf32, #tpu.memory_space<vmem>>, vector<256x128xf32>,
    return
  }
  func.func @transform_0(%arg0: i32) -> (i32, i32) {
    %c0_i32 = arith.constant 0 : i32
    %c0_i32_0 = arith.constant 0 : i32
    return %arg0, %c0_i32 : i32, i32
  }
  func.func @transform_1(%arg0: i32) -> (i32, i32) {
    %c0_i32 = arith.constant 0 : i32
    %c0_i32_0 = arith.constant 0 : i32
    %c0_i32_1 = arith.constant 0 : i32
    return %c0_i32, %c0_i32_0 : i32, i32
  }
  func.func @transform_2(%arg0: i32) -> (i32, i32) {
    %c0_i32 = arith.constant 0 : i32
    %c0_i32_0 = arith.constant 0 : i32
    %c0_i32_1 = arith.constant 0 : i32
    return %c0_i32, %c0_i32_0 : i32, i32
  }
  func.func @transform_3(%arg0: i32) -> (i32, i32) {
    %c0_i32 = arith.constant 0 : i32
    %c0_i32_0 = arith.constant 0 : i32
    %c0_i32_1 = arith.constant 0 : i32
    return %c0_i32, %c0_i32_0 : i32, i32
  }
  func.func @transform_4(%arg0: i32) -> (i32, i32) {
    %c0_i32 = arith.constant 0 : i32
    %c0_i32_0 = arith.constant 0 : i32
    %c0_i32_1 = arith.constant 0 : i32
    return %c0_i32, %c0_i32_0 : i32, i32
  }
  func.func @transform_5(%arg0: i32) -> (i32, i32) {
    %c0_i32 = arith.constant 0 : i32
    %c0_i32_0 = arith.constant 0 : i32
    %c0_i32_1 = arith.constant 0 : i32
    return %c0_i32, %c0_i32_0 : i32, i32
  }
  func.func @transform_6(%arg0: i32) -> (i32, i32) {
    %c0_i32 = arith.constant 0 : i32
    %c0_i32_0 = arith.constant 0 : i32
    %c0_i32_1 = arith.constant 0 : i32
    return %c0_i32, %c0_i32_0 : i32, i32
  }
  func.func @transform_7(%arg0: i32) -> (i32, i32) {
    %c0_i32 = arith.constant 0 : i32
    %c0_i32_0 = arith.constant 0 : i32
    %c0_i32_1 = arith.constant 0 : i32
    return %c0_i32, %c0_i32_0 : i32, i32
  }
  func.func @transform_8(%arg0: i32) -> (i32, i32) {
    %c0_i32 = arith.constant 0 : i32
    %c0_i32_0 = arith.constant 0 : i32
    %c0_i32_1 = arith.constant 0 : i32
    return %c0_i32, %c0_i32_0 : i32, i32
  }
  func.func @transform_9(%arg0: i32) -> (i32, i32) {
    %c0_i32 = arith.constant 0 : i32
    %c0_i32_0 = arith.constant 0 : i32
    return %arg0, %c0_i32 : i32, i32
  }
}

</mosaic_0001>

<bundles_post_ra>
// kernel: tpu_custom_call.1
= control target key start
LH: loop header
LB: loop body
LE: loop exit
PB: predicated region body
PF: predicated region fallthrough
CT: control target
= control target key end

     0   :  { %vm203_vm0 = vcmask 1040384   ;;  %vm154_vm1 = vcmask 15360   ;;  %s2678_s0 = inlined_call_operand.vmem [shape: bf16[256,2], index: 0, kind: input, shape index: {}]   ;;  %s2679_s1 = inlined_call_operand.vmem [shape: bf16[2,12], index: 1, kind: input, shape index: {}]   ;;  %s2680_s2 = inlined_call_operand.vmem [shape: f32[1,12], index: 2, kind: input, shape index: {}]   ;;  %s2681_s3 = inlined_call_operand.vmem [shape: f32[12,8], index: 3, kind: input, shape index: {}]   ;;  %s2682_s4 = inlined_call_operand.vmem [shape: f32[1,8], index: 4, kind: input, shape index: {}]   ;;  %s2683_s5 = inlined_call_operand.vmem [shape: f32[8,4], index: 5, kind: input, shape index: {}]   ;;  %s2684_s6 = inlined_call_operand.vmem [shape: f32[1,4], index: 6, kind: input, shape index: {}]   ;;  %s2685_s7 = inlined_call_operand.vmem [shape: f32[4,128], index: 7, kind: input, shape index: {}]   ;;  %s2686_s8 = inlined_call_operand.vmem [shape: f32[1,128], index: 8, kind: input, shape index: {}]   ;;  %s2687_s9 = inlined_call_operand.hbm [shape: f32[256,128], index: 9, kind: output, shape index: {}]  }
   0x1   :  { %v66_v0 = vld [vmem:[%s2679_s1] sm:$0x1]  ;;  %v1991_v3 = vld [vmem:[%s2678_s0 + $0x8] sm:$0xff]   ;;  %v1992_v4 = vld [vmem:[%s2678_s0 + $0x10] sm:$0xff]  }
   0x2   :  { %v1990_v1 = vld [vmem:[%s2678_s0] sm:$0xff]   ;;  %1985 = vmatprep.subr.msk.bf16.mxu0 %vm203_vm0, %v66_v0  ;;  %v205_v2 = vsel %vm203_vm0, %v66_v0, 0  ;;  %v1993_v5 = vld [vmem:[%s2678_s0 + $0x18] sm:$0xff]  }
   0x3   :  { %1794 = vmatpush3.bf16.msra.mxu0 %v205_v2  ;;  %1795 = vmatprep.mubr.msk.bf16.mxu0 %vm154_vm1, %v1990_v1  ;;  %v1994_v6 = vld [vmem:[%s2678_s0 + $0x20] sm:$0xff]  }
   0x6   :  { %1796 = vmatmul.mubr.msk.bf16.vlgmr.msra.gmra.mrb[0].mxu0 %vm154_vm1, %v1991_v3 }
   0x7   :  { %1799 = vmatprep.mubr.msk.bf16.mxu0 %vm154_vm1, %v1992_v4 }
   0xe   :  { %1800 = vmatmul.mubr.msk.bf16.gmra.mrb[4].mxu0 %vm154_vm1, %v1993_v5 }
   0xf   :  { %1803 = vmatprep.mubr.msk.bf16.mxu0 %vm154_vm1, %v1994_v6 }
  0x10   :  { %14 = vsyncpa [#allocation3], 0  ;;  %v1995_v7 = vld [vmem:[%s2678_s0 + $0x28] sm:$0xff]   ;;  %v1996_v8 = vld [vmem:[%s2678_s0 + $0x30] sm:$0xff]   ;;  %vm506_vm2 = vcmask 1043456   ;;  %vm2286_vm3 = vmmov 1  }
  0x11   :  { %v1997_v9 = vld [vmem:[%s2678_s0 + $0x38] sm:$0xff]   ;;  %v1998_v10 = vld [vmem:[%s2678_s0 + $0x40] sm:$0xff]   ;;  %v1999_v11 = vld [vmem:[%s2678_s0 + $0x48] sm:$0xff]   ;;  %vm409_vm5 = vcmask 97280   ;;  %vm775_vm6 = vcmask 64512   ;;  %vm1137_vm7 = vcmask 31744  }
  0x12   :  { %v2000_v12 = vld [vmem:[%s2678_s0 + $0x50] sm:$0xff]   ;;  %v2001_v13 = vld [vmem:[%s2678_s0 + $0x58] sm:$0xff]   ;;  %v2002_v14 = vld [vmem:[%s2678_s0 + $0x60] sm:$0xff]  }
  0x13   :  { %v2003_v15 = vld [vmem:[%s2678_s0 + $0x68] sm:$0xff]   ;;  %v2004_v16 = vld [vmem:[%s2678_s0 + $0x70] sm:$0xff]   ;;  %v2005_v17 = vld [vmem:[%s2678_s0 + $0x78] sm:$0xff]  }
  0x14   :  { %v400_v18 = vld [vmem:[%s2681_s3] sm:$0xff]  ;;  %v401_v19 = vld [vmem:[%s2681_s3 + $0x8] sm:$0xf]  ;;  %vm1980_vm4 = vmpackc.low %vm506_vm2, %vm2286_vm3 }
  0x15   :  { %v1979_v20 = vpack.c.bf16 %v401_v19, %v400_v18  ;;  %v767_v21 = vld [vmem:[%s2683_s5] sm:$0xff] }
  0x16   :  { %1804 = vmatmul.mubr.msk.bf16.gmra.mrb[8].mxu0 %vm154_vm1, %v1995_v7  ;;  %1879 = vmatprep.subr.mxu0 %v767_v21  ;;  %v2420_v22 = vld [vmem:[%s2680_s2] ss:$0 sm:$0xff] }
  0x17   :  { %1807 = vmatprep.mubr.msk.bf16.mxu0 %vm154_vm1, %v1996_v8  ;;  %1981 = vmatprep.subr.msk.bf16.mxu1 %vm1980_vm4, %v1979_v20 }
  0x18   :  { %1984 = vmatpush3.bf16.msk.msra.mxu1 %vm1980_vm4, %v1979_v20  ;;  %1880 = vmatpush3.msra.mxu0 %v767_v21 }
  0x1e   :  { %1808 = vmatmul.mubr.msk.bf16.gmra.mrb[12].mxu0 %vm154_vm1, %v1997_v9 }
  0x1f   :  { %1811 = vmatprep.mubr.msk.bf16.mxu0 %vm154_vm1, %v1998_v10 }
  0x26   :  { %1812 = vmatmul.mubr.msk.bf16.gmra.mrb[16].mxu0 %vm154_vm1, %v1999_v11 }
  0x27   :  { %1815 = vmatprep.mubr.msk.bf16.mxu0 %vm154_vm1, %v2000_v12 }
  0x2e   :  { %1816 = vmatmul.mubr.msk.bf16.gmra.mrb[20].mxu0 %vm154_vm1, %v2001_v13 }
  0x2f   :  { %1819 = vmatprep.mubr.msk.bf16.mxu0 %vm154_vm1, %v2002_v14 }
  0x36   :  { %1820 = vmatmul.mubr.msk.bf16.gmra.mrb[24].mxu0 %vm154_vm1, %v2003_v15 }
  0x37   :  { %1823 = vmatprep.mubr.msk.bf16.mxu0 %vm154_vm1, %v2004_v16 }
  0x3e   :  { %1824 = vmatmul.mubr.msk.bf16.gmra.mrb[28].mxu0 %vm154_vm1, %v2005_v17 }
  0xd9   :  { %v1797_v23 = vpop.f32.mrb[0].mxu0 }
  0xda   :  { %v241_v24 = vpop.f32.mrb[1].mxu0  ;;  %v250_v27 = vadd.f32 %v1797_v23, %v2420_v22 }
  0xdb   :  { %v242_v25 = vadd.f32 %v2420_v22, %v241_v24  ;;  %v1798_v26 = vpop.f32.mrb[2].mxu0 }
  0xdc   :  { %v244_v28 = vpop.f32.mrb[3].mxu0  ;;  %v253_v30 = vadd.f32 %v1798_v26, %v2420_v22 }
  0xdd   :  { %2006 = vtanh.f32 %v242_v25  ;;  %v245_v29 = vadd.f32 %v2420_v22, %v244_v28 }
  0xdf   :  { %2008 = vtanh.f32 %v245_v29 }
  0xe0   :  { %2010 = vtanh.f32 %v250_v27 }
  0xe1   :  { %v1801_v31 = vpop.f32.mrb[4].mxu0  ;;  %2012 = vtanh.f32 %v253_v30 }
  0xe2   :  { %v257_v32 = vpop.f32.mrb[5].mxu0  ;;  %v266_v35 = vadd.f32 %v1801_v31, %v2420_v22 }
  0xe3   :  { %v258_v33 = vadd.f32 %v2420_v22, %v257_v32  ;;  %v1802_v34 = vpop.f32.mrb[6].mxu0 }
  0xe4   :  { %v260_v36 = vpop.f32.mrb[7].mxu0  ;;  %v269_v39 = vadd.f32 %v1802_v34, %v2420_v22 }
  0xe5   :  { %2014 = vtanh.f32 %v258_v33  ;;  %v261_v37 = vadd.f32 %v2420_v22, %v260_v36 }
  0xe7   :  { %v2007_v38 = vpop.eup %2006  ;;  %2016 = vtanh.f32 %v261_v37 }
  0xe8   :  { %2018 = vtanh.f32 %v266_v35  ;;  %1831 = vmatprep.mubr.msk.f32.mxu1 %vm409_vm5, %v2007_v38 }
  0xe9   :  { %v2009_v40 = vpop.eup %2008  ;;  %v1805_v41 = vpop.f32.mrb[8].mxu0  ;;  %2020 = vtanh.f32 %v269_v39 }
  0xea   :  { %v2011_v42 = vpop.eup %2010  ;;  %v273_v43 = vpop.f32.mrb[9].mxu0  ;;  %1832 = vmatmul.mubr.msk.f32.vlgmr.msra.gmra.mrb[0].mxu1 %vm409_vm5, %v2009_v40  ;;  %v282_v46 = vadd.f32 %v1805_v41, %v2420_v22 }
  0xeb   :  { %v274_v44 = vadd.f32 %v2420_v22, %v273_v43  ;;  %v1806_v45 = vpop.f32.mrb[10].mxu0  ;;  %1834 = vmatprep.mubr.msk.f32.mxu1 %vm409_vm5, %v2011_v42  ;;  %v2013_v48 = vpop.eup %2012 }
  0xec   :  { %v276_v47 = vpop.f32.mrb[11].mxu0  ;;  %v285_v51 = vadd.f32 %v1806_v45, %v2420_v22 }
  0xed   :  { %2022 = vtanh.f32 %v274_v44  ;;  %v277_v49 = vadd.f32 %v2420_v22, %v276_v47 }
  0xee   :  { %1835 = vmatmul.mubr.msk.f32.gmra.mrb[2].mxu1 %vm409_vm5, %v2013_v48 }
  0xef   :  { %v2015_v50 = vpop.eup %2014  ;;  %2024 = vtanh.f32 %v277_v49 }
  0xf0   :  { %2026 = vtanh.f32 %v282_v46  ;;  %1837 = vmatprep.mubr.msk.f32.mxu1 %vm409_vm5, %v2015_v50 }
  0xf1   :  { %v2017_v52 = vpop.eup %2016  ;;  %v1809_v53 = vpop.f32.mrb[12].mxu0  ;;  %2028 = vtanh.f32 %v285_v51 }
  0xf2   :  { %v2019_v54 = vpop.eup %2018  ;;  %v289_v55 = vpop.f32.mrb[13].mxu0  ;;  %1838 = vmatmul.mubr.msk.f32.gmra.mrb[4].mxu1 %vm409_vm5, %v2017_v52  ;;  %v298_v58 = vadd.f32 %v1809_v53, %v2420_v22 }
  0xf3   :  { %v290_v56 = vadd.f32 %v2420_v22, %v289_v55  ;;  %v1810_v57 = vpop.f32.mrb[14].mxu0  ;;  %1840 = vmatprep.mubr.msk.f32.mxu1 %vm409_vm5, %v2019_v54  ;;  %v2021_v60 = vpop.eup %2020  ;;  %v1129_v55 = vld [vmem:[%s2685_s7] sm:$0xf] }
  0xf4   :  { %v292_v59 = vpop.f32.mrb[15].mxu0  ;;  %v301_v63 = vadd.f32 %v1810_v57, %v2420_v22  ;;  %1929 = vmatprep.subr.msk.mxu1 %vm506_vm2, %v1129_v55 }
  0xf5   :  { %2030 = vtanh.f32 %v290_v56  ;;  %v293_v61 = vadd.f32 %v2420_v22, %v292_v59  ;;  %1930 = vmatpush3.msk.msra.mxu1 %vm506_vm2, %v1129_v55  ;;  %v2494_v56 = vld [vmem:[%s2682_s4] ss:$0 sm:$0xff] }
  0xf6   :  { %1841 = vmatmul.mubr.msk.f32.gmra.mrb[6].mxu1 %vm409_vm5, %v2021_v60 }
  0xf7   :  { %v2023_v62 = vpop.eup %2022  ;;  %2032 = vtanh.f32 %v293_v61 }
  0xf8   :  { %2034 = vtanh.f32 %v298_v58  ;;  %1843 = vmatprep.mubr.msk.f32.mxu1 %vm409_vm5, %v2023_v62 }
  0xf9   :  { %v2025_v0 = vpop.eup %2024  ;;  %v1813_v1 = vpop.f32.mrb[16].mxu0  ;;  %2036 = vtanh.f32 %v301_v63 }
  0xfa   :  { %v2027_v2 = vpop.eup %2026  ;;  %v305_v3 = vpop.f32.mrb[17].mxu0  ;;  %1844 = vmatmul.mubr.msk.f32.gmra.mrb[8].mxu1 %vm409_vm5, %v2025_v0  ;;  %v314_v6 = vadd.f32 %v1813_v1, %v2420_v22 }
  0xfb   :  { %v306_v4 = vadd.f32 %v2420_v22, %v305_v3  ;;  %v1814_v5 = vpop.f32.mrb[18].mxu0  ;;  %1846 = vmatprep.mubr.msk.f32.mxu1 %vm409_vm5, %v2027_v2  ;;  %v2029_v8 = vpop.eup %2028 }
  0xfc   :  { %v308_v7 = vpop.f32.mrb[19].mxu0  ;;  %v317_v11 = vadd.f32 %v1814_v5, %v2420_v22 }
  0xfd   :  { %2038 = vtanh.f32 %v306_v4  ;;  %v309_v9 = vadd.f32 %v2420_v22, %v308_v7 }
  0xfe   :  { %1847 = vmatmul.mubr.msk.f32.gmra.mrb[10].mxu1 %vm409_vm5, %v2029_v8 }
  0xff   :  { %v2031_v10 = vpop.eup %2030  ;;  %2040 = vtanh.f32 %v309_v9 }
 0x100   :  { %2042 = vtanh.f32 %v314_v6  ;;  %1849 = vmatprep.mubr.msk.f32.mxu1 %vm409_vm5, %v2031_v10 }
 0x101   :  { %v2033_v12 = vpop.eup %2032  ;;  %v1817_v13 = vpop.f32.mrb[20].mxu0  ;;  %2044 = vtanh.f32 %v317_v11 }
 0x102   :  { %v2035_v14 = vpop.eup %2034  ;;  %v321_v15 = vpop.f32.mrb[21].mxu0  ;;  %1850 = vmatmul.mubr.msk.f32.gmra.mrb[12].mxu1 %vm409_vm5, %v2033_v12  ;;  %v330_v18 = vadd.f32 %v1817_v13, %v2420_v22 }
 0x103   :  { %v322_v16 = vadd.f32 %v2420_v22, %v321_v15  ;;  %v1818_v17 = vpop.f32.mrb[22].mxu0  ;;  %1852 = vmatprep.mubr.msk.f32.mxu1 %vm409_vm5, %v2035_v14  ;;  %v2037_v20 = vpop.eup %2036 }
 0x104   :  { %v324_v19 = vpop.f32.mrb[23].mxu0  ;;  %v333_v24 = vadd.f32 %v1818_v17, %v2420_v22 }
 0x105   :  { %2046 = vtanh.f32 %v322_v16  ;;  %v325_v21 = vadd.f32 %v2420_v22, %v324_v19 }
 0x106   :  { %1853 = vmatmul.mubr.msk.f32.gmra.mrb[14].mxu1 %vm409_vm5, %v2037_v20 }
 0x107   :  { %v2039_v23 = vpop.eup %2038  ;;  %2048 = vtanh.f32 %v325_v21 }
 0x108   :  { %2050 = vtanh.f32 %v330_v18  ;;  %1855 = vmatprep.mubr.msk.f32.mxu1 %vm409_vm5, %v2039_v23 }
 0x109   :  { %v2041_v25 = vpop.eup %2040  ;;  %v1821_v26 = vpop.f32.mrb[24].mxu0  ;;  %2052 = vtanh.f32 %v333_v24 }
 0x10a   :  { %v2043_v27 = vpop.eup %2042  ;;  %v337_v28 = vpop.f32.mrb[25].mxu0  ;;  %1856 = vmatmul.mubr.msk.f32.gmra.mrb[16].mxu1 %vm409_vm5, %v2041_v25  ;;  %v346_v31 = vadd.f32 %v1821_v26, %v2420_v22 }
 0x10b   :  { %v338_v29 = vadd.f32 %v2420_v22, %v337_v28  ;;  %v1822_v30 = vpop.f32.mrb[26].mxu0  ;;  %1858 = vmatprep.mubr.msk.f32.mxu1 %vm409_vm5, %v2043_v27  ;;  %v2045_v33 = vpop.eup %2044 }
 0x10c   :  { %v340_v32 = vpop.f32.mrb[27].mxu0  ;;  %v349_v36 = vadd.f32 %v1822_v30, %v2420_v22 }
 0x10d   :  { %2054 = vtanh.f32 %v338_v29  ;;  %v341_v34 = vadd.f32 %v2420_v22, %v340_v32 }
 0x10e   :  { %1859 = vmatmul.mubr.msk.f32.gmra.mrb[18].mxu1 %vm409_vm5, %v2045_v33 }
 0x10f   :  { %v2047_v35 = vpop.eup %2046  ;;  %2056 = vtanh.f32 %v341_v34 }
 0x110   :  { %2058 = vtanh.f32 %v346_v31  ;;  %1861 = vmatprep.mubr.msk.f32.mxu1 %vm409_vm5, %v2047_v35 }
 0x111   :  { %v2049_v37 = vpop.eup %2048  ;;  %v1825_v38 = vpop.f32.mrb[28].mxu0  ;;  %2060 = vtanh.f32 %v349_v36 }
 0x112   :  { %v2051_v39 = vpop.eup %2050  ;;  %v353_v40 = vpop.f32.mrb[29].mxu0  ;;  %1862 = vmatmul.mubr.msk.f32.gmra.mrb[20].mxu1 %vm409_vm5, %v2049_v37  ;;  %v362_v43 = vadd.f32 %v1825_v38, %v2420_v22 }
 0x113   :  { %v354_v41 = vadd.f32 %v2420_v22, %v353_v40  ;;  %v1826_v42 = vpop.f32.mrb[30].mxu0  ;;  %1864 = vmatprep.mubr.msk.f32.mxu1 %vm409_vm5, %v2051_v39  ;;  %v2053_v45 = vpop.eup %2052 }
 0x114   :  { %v356_v44 = vpop.f32.mrb[31].mxu0  ;;  %v365_v48 = vadd.f32 %v1826_v42, %v2420_v22 }
 0x115   :  { %2062 = vtanh.f32 %v354_v41  ;;  %v357_v46 = vadd.f32 %v2420_v22, %v356_v44 }
 0x116   :  { %1865 = vmatmul.mubr.msk.f32.gmra.mrb[22].mxu1 %vm409_vm5, %v2053_v45 }
 0x117   :  { %v2055_v47 = vpop.eup %2054  ;;  %2064 = vtanh.f32 %v357_v46 }
 0x118   :  { %2066 = vtanh.f32 %v362_v43  ;;  %1867 = vmatprep.mubr.msk.f32.mxu1 %vm409_vm5, %v2055_v47 }
 0x119   :  { %v2057_v49 = vpop.eup %2056  ;;  %2068 = vtanh.f32 %v365_v48 }
 0x11a   :  { %v2059_v50 = vpop.eup %2058  ;;  %1868 = vmatmul.mubr.msk.f32.gmra.mrb[24].mxu1 %vm409_vm5, %v2057_v49 }
 0x11b   :  { %1870 = vmatprep.mubr.msk.f32.mxu1 %vm409_vm5, %v2059_v50  ;;  %v2061_v51 = vpop.eup %2060 }
 0x11e   :  { %1871 = vmatmul.mubr.msk.f32.gmra.mrb[26].mxu1 %vm409_vm5, %v2061_v51 }
 0x11f   :  { %v2063_v52 = vpop.eup %2062 }
 0x120   :  { %1873 = vmatprep.mubr.msk.f32.mxu1 %vm409_vm5, %v2063_v52 }
 0x121   :  { %v2065_v53 = vpop.eup %2064 }
 0x122   :  { %v2067_v54 = vpop.eup %2066  ;;  %1874 = vmatmul.mubr.msk.f32.gmra.mrb[28].mxu1 %vm409_vm5, %v2065_v53 }
 0x123   :  { %1876 = vmatprep.mubr.msk.f32.mxu1 %vm409_vm5, %v2067_v54  ;;  %v2069_v22 = vpop.eup %2068 }
 0x126   :  { %1877 = vmatmul.mubr.msk.f32.gmra.mrb[30].mxu1 %vm409_vm5, %v2069_v22 }
 0x1bd   :  { %v1833_v57 = vpop.f32.mrb[0].mxu1 }
 0x1be   :  { %v582_v58 = vadd.f32 %v1833_v57, %v2494_v56  ;;  %v576_v59 = vpop.f32.mrb[1].mxu1 }
 0x1bf   :  { %v577_v60 = vadd.f32 %v2494_v56, %v576_v59 }
 0x1c1   :  { %2070 = vtanh.f32 %v577_v60  ;;  %v1836_v61 = vpop.f32.mrb[2].mxu1 }
 0x1c2   :  { %2072 = vtanh.f32 %v582_v58  ;;  %v592_v62 = vadd.f32 %v1836_v61, %v2494_v56  ;;  %v586_v63 = vpop.f32.mrb[3].mxu1 }
 0x1c3   :  { %v587_v0 = vadd.f32 %v2494_v56, %v586_v63 }
 0x1c5   :  { %2074 = vtanh.f32 %v587_v0  ;;  %v1839_v1 = vpop.f32.mrb[4].mxu1 }
 0x1c6   :  { %2076 = vtanh.f32 %v592_v62  ;;  %v602_v2 = vadd.f32 %v1839_v1, %v2494_v56  ;;  %v596_v3 = vpop.f32.mrb[5].mxu1 }
 0x1c7   :  { %v597_v4 = vadd.f32 %v2494_v56, %v596_v3 }
 0x1c9   :  { %2078 = vtanh.f32 %v597_v4  ;;  %v1842_v5 = vpop.f32.mrb[6].mxu1 }
 0x1ca   :  { %2080 = vtanh.f32 %v602_v2  ;;  %v612_v6 = vadd.f32 %v1842_v5, %v2494_v56  ;;  %v606_v7 = vpop.f32.mrb[7].mxu1 }
 0x1cb   :  { %v2071_v8 = vpop.eup %2070  ;;  %v607_v9 = vadd.f32 %v2494_v56, %v606_v7 }
 0x1cc   :  { %v2073_v10 = vpop.eup %2072  ;;  %1881 = vmatprep.mubr.msk.f32.mxu0 %vm775_vm6, %v2071_v8 }
 0x1cd   :  { %2082 = vtanh.f32 %v607_v9  ;;  %v1845_v11 = vpop.f32.mrb[8].mxu1  ;;  %1882 = vmatmul.mubr.msk.f32.vlgmr.msra.gmra.mrb[32].mxu0 %vm775_vm6, %v2073_v10 }
 0x1ce   :  { %2084 = vtanh.f32 %v612_v6  ;;  %v622_v12 = vadd.f32 %v1845_v11, %v2494_v56  ;;  %v616_v13 = vpop.f32.mrb[9].mxu1 }
 0x1cf   :  { %v2075_v14 = vpop.eup %2074  ;;  %v617_v15 = vadd.f32 %v2494_v56, %v616_v13 }
 0x1d0   :  { %v2077_v16 = vpop.eup %2076  ;;  %1884 = vmatprep.mubr.msk.f32.mxu0 %vm775_vm6, %v2075_v14 }
 0x1d1   :  { %2086 = vtanh.f32 %v617_v15  ;;  %v1848_v17 = vpop.f32.mrb[10].mxu1  ;;  %1885 = vmatmul.mubr.msk.f32.gmra.mrb[34].mxu0 %vm775_vm6, %v2077_v16 }
 0x1d2   :  { %2088 = vtanh.f32 %v622_v12  ;;  %v632_v18 = vadd.f32 %v1848_v17, %v2494_v56  ;;  %v626_v19 = vpop.f32.mrb[11].mxu1 }
 0x1d3   :  { %v2079_v20 = vpop.eup %2078  ;;  %v627_v21 = vadd.f32 %v2494_v56, %v626_v19 }
 0x1d4   :  { %v2081_v23 = vpop.eup %2080  ;;  %1887 = vmatprep.mubr.msk.f32.mxu0 %vm775_vm6, %v2079_v20 }
 0x1d5   :  { %2090 = vtanh.f32 %v627_v21  ;;  %v1851_v24 = vpop.f32.mrb[12].mxu1  ;;  %1888 = vmatmul.mubr.msk.f32.gmra.mrb[36].mxu0 %vm775_vm6, %v2081_v23 }
 0x1d6   :  { %2092 = vtanh.f32 %v632_v18  ;;  %v642_v25 = vadd.f32 %v1851_v24, %v2494_v56  ;;  %v636_v26 = vpop.f32.mrb[13].mxu1 }
 0x1d7   :  { %v2083_v27 = vpop.eup %2082  ;;  %v637_v28 = vadd.f32 %v2494_v56, %v636_v26  ;;  %v2563_v26 = vld [vmem:[%s2684_s6] ss:$0 sm:$0xff] }
 0x1d8   :  { %v2085_v29 = vpop.eup %2084  ;;  %1890 = vmatprep.mubr.msk.f32.mxu0 %vm775_vm6, %v2083_v27 }
 0x1d9   :  { %2094 = vtanh.f32 %v637_v28  ;;  %v1854_v30 = vpop.f32.mrb[14].mxu1  ;;  %1891 = vmatmul.mubr.msk.f32.gmra.mrb[38].mxu0 %vm775_vm6, %v2085_v29 }
 0x1da   :  { %2096 = vtanh.f32 %v642_v25  ;;  %v652_v31 = vadd.f32 %v1854_v30, %v2494_v56  ;;  %v646_v32 = vpop.f32.mrb[15].mxu1 }
 0x1db   :  { %v2087_v33 = vpop.eup %2086  ;;  %v647_v34 = vadd.f32 %v2494_v56, %v646_v32 }
 0x1dc   :  { %v2089_v35 = vpop.eup %2088  ;;  %1893 = vmatprep.mubr.msk.f32.mxu0 %vm775_vm6, %v2087_v33 }
 0x1dd   :  { %2098 = vtanh.f32 %v647_v34  ;;  %v1857_v36 = vpop.f32.mrb[16].mxu1  ;;  %1894 = vmatmul.mubr.msk.f32.gmra.mrb[40].mxu0 %vm775_vm6, %v2089_v35 }
 0x1de   :  { %2100 = vtanh.f32 %v652_v31  ;;  %v662_v37 = vadd.f32 %v1857_v36, %v2494_v56  ;;  %v656_v38 = vpop.f32.mrb[17].mxu1 }
 0x1df   :  { %v2091_v39 = vpop.eup %2090  ;;  %v657_v40 = vadd.f32 %v2494_v56, %v656_v38 }
 0x1e0   :  { %v2093_v41 = vpop.eup %2092  ;;  %1896 = vmatprep.mubr.msk.f32.mxu0 %vm775_vm6, %v2091_v39 }
 0x1e1   :  { %2102 = vtanh.f32 %v657_v40  ;;  %v1860_v42 = vpop.f32.mrb[18].mxu1  ;;  %1897 = vmatmul.mubr.msk.f32.gmra.mrb[42].mxu0 %vm775_vm6, %v2093_v41 }
 0x1e2   :  { %2104 = vtanh.f32 %v662_v37  ;;  %v672_v43 = vadd.f32 %v1860_v42, %v2494_v56  ;;  %v666_v44 = vpop.f32.mrb[19].mxu1 }
 0x1e3   :  { %v2095_v45 = vpop.eup %2094  ;;  %v667_v46 = vadd.f32 %v2494_v56, %v666_v44 }
 0x1e4   :  { %v2097_v47 = vpop.eup %2096  ;;  %1899 = vmatprep.mubr.msk.f32.mxu0 %vm775_vm6, %v2095_v45 }
 0x1e5   :  { %2106 = vtanh.f32 %v667_v46  ;;  %v1863_v48 = vpop.f32.mrb[20].mxu1  ;;  %1900 = vmatmul.mubr.msk.f32.gmra.mrb[44].mxu0 %vm775_vm6, %v2097_v47 }
 0x1e6   :  { %2108 = vtanh.f32 %v672_v43  ;;  %v682_v49 = vadd.f32 %v1863_v48, %v2494_v56  ;;  %v676_v50 = vpop.f32.mrb[21].mxu1 }
 0x1e7   :  { %v2099_v51 = vpop.eup %2098  ;;  %v677_v52 = vadd.f32 %v2494_v56, %v676_v50 }
 0x1e8   :  { %v2101_v53 = vpop.eup %2100  ;;  %1902 = vmatprep.mubr.msk.f32.mxu0 %vm775_vm6, %v2099_v51 }
 0x1e9   :  { %2110 = vtanh.f32 %v677_v52  ;;  %v1866_v54 = vpop.f32.mrb[22].mxu1  ;;  %1903 = vmatmul.mubr.msk.f32.gmra.mrb[46].mxu0 %vm775_vm6, %v2101_v53 }
 0x1ea   :  { %2112 = vtanh.f32 %v682_v49  ;;  %v692_v22 = vadd.f32 %v1866_v54, %v2494_v56  ;;  %v686_v55 = vpop.f32.mrb[23].mxu1 }
 0x1eb   :  { %v2103_v57 = vpop.eup %2102  ;;  %v687_v58 = vadd.f32 %v2494_v56, %v686_v55 }
 0x1ec   :  { %v2105_v59 = vpop.eup %2104  ;;  %1905 = vmatprep.mubr.msk.f32.mxu0 %vm775_vm6, %v2103_v57 }
 0x1ed   :  { %2114 = vtanh.f32 %v687_v58  ;;  %v1869_v60 = vpop.f32.mrb[24].mxu1  ;;  %1906 = vmatmul.mubr.msk.f32.gmra.mrb[48].mxu0 %vm775_vm6, %v2105_v59 }
 0x1ee   :  { %2116 = vtanh.f32 %v692_v22  ;;  %v702_v61 = vadd.f32 %v1869_v60, %v2494_v56  ;;  %v696_v62 = vpop.f32.mrb[25].mxu1 }
 0x1ef   :  { %v2107_v63 = vpop.eup %2106  ;;  %v697_v0 = vadd.f32 %v2494_v56, %v696_v62 }
 0x1f0   :  { %v2109_v1 = vpop.eup %2108  ;;  %1908 = vmatprep.mubr.msk.f32.mxu0 %vm775_vm6, %v2107_v63 }
 0x1f1   :  { %2118 = vtanh.f32 %v697_v0  ;;  %v1872_v2 = vpop.f32.mrb[26].mxu1  ;;  %1909 = vmatmul.mubr.msk.f32.gmra.mrb[50].mxu0 %vm775_vm6, %v2109_v1 }
 0x1f2   :  { %2120 = vtanh.f32 %v702_v61  ;;  %v712_v3 = vadd.f32 %v1872_v2, %v2494_v56  ;;  %v706_v4 = vpop.f32.mrb[27].mxu1 }
 0x1f3   :  { %v2111_v5 = vpop.eup %2110  ;;  %v707_v6 = vadd.f32 %v2494_v56, %v706_v4 }
 0x1f4   :  { %v2113_v7 = vpop.eup %2112  ;;  %1911 = vmatprep.mubr.msk.f32.mxu0 %vm775_vm6, %v2111_v5 }
 0x1f5   :  { %2122 = vtanh.f32 %v707_v6  ;;  %v1875_v8 = vpop.f32.mrb[28].mxu1  ;;  %1912 = vmatmul.mubr.msk.f32.gmra.mrb[52].mxu0 %vm775_vm6, %v2113_v7 }
 0x1f6   :  { %2124 = vtanh.f32 %v712_v3  ;;  %v722_v9 = vadd.f32 %v1875_v8, %v2494_v56  ;;  %v716_v10 = vpop.f32.mrb[29].mxu1 }
 0x1f7   :  { %v2115_v11 = vpop.eup %2114  ;;  %v717_v12 = vadd.f32 %v2494_v56, %v716_v10 }
 0x1f8   :  { %v2117_v13 = vpop.eup %2116  ;;  %1914 = vmatprep.mubr.msk.f32.mxu0 %vm775_vm6, %v2115_v11 }
 0x1f9   :  { %2126 = vtanh.f32 %v717_v12  ;;  %v1878_v14 = vpop.f32.mrb[30].mxu1  ;;  %1915 = vmatmul.mubr.msk.f32.gmra.mrb[54].mxu0 %vm775_vm6, %v2117_v13 }
 0x1fa   :  { %2128 = vtanh.f32 %v722_v9  ;;  %v732_v15 = vadd.f32 %v1878_v14, %v2494_v56  ;;  %v726_v16 = vpop.f32.mrb[31].mxu1 }
 0x1fb   :  { %v2119_v17 = vpop.eup %2118  ;;  %v727_v18 = vadd.f32 %v2494_v56, %v726_v16 }
 0x1fc   :  { %v2121_v19 = vpop.eup %2120  ;;  %1917 = vmatprep.mubr.msk.f32.mxu0 %vm775_vm6, %v2119_v17 }
 0x1fd   :  { %2130 = vtanh.f32 %v727_v18  ;;  %1918 = vmatmul.mubr.msk.f32.gmra.mrb[56].mxu0 %vm775_vm6, %v2121_v19 }
 0x1fe   :  { %2132 = vtanh.f32 %v732_v15 }
 0x1ff   :  { %v2123_v20 = vpop.eup %2122 }
 0x200   :  { %v2125_v21 = vpop.eup %2124  ;;  %1920 = vmatprep.mubr.msk.f32.mxu0 %vm775_vm6, %v2123_v20 }
 0x201   :  { %1921 = vmatmul.mubr.msk.f32.gmra.mrb[58].mxu0 %vm775_vm6, %v2125_v21 }
 0x203   :  { %v2127_v23 = vpop.eup %2126 }
 0x204   :  { %v2129_v24 = vpop.eup %2128  ;;  %1923 = vmatprep.mubr.msk.f32.mxu0 %vm775_vm6, %v2127_v23 }
 0x205   :  { %1924 = vmatmul.mubr.msk.f32.gmra.mrb[60].mxu0 %vm775_vm6, %v2129_v24 }
 0x207   :  { %v2131_v56 = vpop.eup %2130 }
 0x208   :  { %v2133_v25 = vpop.eup %2132  ;;  %1926 = vmatprep.mubr.msk.f32.mxu0 %vm775_vm6, %v2131_v56 }
 0x209   :  { %1927 = vmatmul.mubr.msk.f32.gmra.mrb[62].mxu0 %vm775_vm6, %v2133_v25 }
 0x2a0   :  { %v1883_v27 = vpop.f32.mrb[32].mxu0 }
 0x2a1   :  { %v944_v28 = vadd.f32 %v1883_v27, %v2563_v26  ;;  %v938_v29 = vpop.f32.mrb[33].mxu0 }
 0x2a2   :  { %v939_v30 = vadd.f32 %v2563_v26, %v938_v29 }
 0x2a4   :  { %2134 = vtanh.f32 %v939_v30  ;;  %v1886_v31 = vpop.f32.mrb[34].mxu0 }
 0x2a5   :  { %2136 = vtanh.f32 %v944_v28  ;;  %v954_v32 = vadd.f32 %v1886_v31, %v2563_v26  ;;  %v948_v33 = vpop.f32.mrb[35].mxu0 }
 0x2a6   :  { %v949_v34 = vadd.f32 %v2563_v26, %v948_v33 }
 0x2a8   :  { %2138 = vtanh.f32 %v949_v34  ;;  %v1889_v35 = vpop.f32.mrb[36].mxu0 }
 0x2a9   :  { %2140 = vtanh.f32 %v954_v32  ;;  %v964_v36 = vadd.f32 %v1889_v35, %v2563_v26  ;;  %v958_v37 = vpop.f32.mrb[37].mxu0 }
 0x2aa   :  { %v959_v38 = vadd.f32 %v2563_v26, %v958_v37 }
 0x2ac   :  { %2142 = vtanh.f32 %v959_v38  ;;  %v1892_v39 = vpop.f32.mrb[38].mxu0 }
 0x2ad   :  { %2144 = vtanh.f32 %v964_v36  ;;  %v974_v40 = vadd.f32 %v1892_v39, %v2563_v26  ;;  %v968_v41 = vpop.f32.mrb[39].mxu0 }
 0x2ae   :  { %v2135_v42 = vpop.eup %2134  ;;  %v969_v43 = vadd.f32 %v2563_v26, %v968_v41 }
 0x2af   :  { %v2137_v44 = vpop.eup %2136  ;;  %1931 = vmatprep.mubr.msk.f32.mxu1 %vm1137_vm7, %v2135_v42 }
 0x2b0   :  { %2146 = vtanh.f32 %v969_v43  ;;  %v1895_v45 = vpop.f32.mrb[40].mxu0  ;;  %1932 = vmatmul.mubr.msk.f32.vlgmr.msra.gmra.mrb[32].mxu1 %vm1137_vm7, %v2137_v44 }
 0x2b1   :  { %2148 = vtanh.f32 %v974_v40  ;;  %v984_v46 = vadd.f32 %v1895_v45, %v2563_v26  ;;  %v978_v47 = vpop.f32.mrb[41].mxu0 }
 0x2b2   :  { %v2139_v48 = vpop.eup %2138  ;;  %v979_v49 = vadd.f32 %v2563_v26, %v978_v47 }
 0x2b3   :  { %v2141_v50 = vpop.eup %2140  ;;  %1934 = vmatprep.mubr.msk.f32.mxu1 %vm1137_vm7, %v2139_v48 }
 0x2b4   :  { %2150 = vtanh.f32 %v979_v49  ;;  %v1898_v51 = vpop.f32.mrb[42].mxu0  ;;  %1935 = vmatmul.mubr.msk.f32.gmra.mrb[34].mxu1 %vm1137_vm7, %v2141_v50 }
 0x2b5   :  { %2152 = vtanh.f32 %v984_v46  ;;  %v994_v52 = vadd.f32 %v1898_v51, %v2563_v26  ;;  %v988_v53 = vpop.f32.mrb[43].mxu0 }
 0x2b6   :  { %v2143_v54 = vpop.eup %2142  ;;  %v989_v22 = vadd.f32 %v2563_v26, %v988_v53 }
 0x2b7   :  { %v2145_v55 = vpop.eup %2144  ;;  %1937 = vmatprep.mubr.msk.f32.mxu1 %vm1137_vm7, %v2143_v54 }
 0x2b8   :  { %2154 = vtanh.f32 %v989_v22  ;;  %v1901_v57 = vpop.f32.mrb[44].mxu0  ;;  %1938 = vmatmul.mubr.msk.f32.gmra.mrb[36].mxu1 %vm1137_vm7, %v2145_v55 }
 0x2b9   :  { %2156 = vtanh.f32 %v994_v52  ;;  %v1004_v58 = vadd.f32 %v1901_v57, %v2563_v26  ;;  %v998_v59 = vpop.f32.mrb[45].mxu0 }
 0x2ba   :  { %v2147_v60 = vpop.eup %2146  ;;  %v999_v61 = vadd.f32 %v2563_v26, %v998_v59  ;;  %v2632_v59 = vld [vmem:[%s2686_s8] ss:$0 sm:$0xff]  ;;  %s2287_s8 = smov [#allocation2]  }
 0x2bb   :  { %v2149_v62 = vpop.eup %2148  ;;  %1940 = vmatprep.mubr.msk.f32.mxu1 %vm1137_vm7, %v2147_v60  ;;  %s1531_s29 = sshll.u32 %s2287_s8, 4  ;;  %s1532_s29 = int_to_ptr.vmem [resolvable:$true] %s1531_s29 }
 0x2bc   :  { %2158 = vtanh.f32 %v999_v61  ;;  %v1904_v63 = vpop.f32.mrb[46].mxu0  ;;  %1941 = vmatmul.mubr.msk.f32.gmra.mrb[38].mxu1 %vm1137_vm7, %v2149_v62  ;;  %s2262_s30 = scalar_lea.vmem %s1532_s29, 4096  ;;  %p2267_p1 = scmp.lt.s32.totalorder %s1532_s29, %s1532_s29 }
 0x2bd   :  { %2160 = vtanh.f32 %v1004_v58  ;;  %v1014_v0 = vadd.f32 %v1904_v63, %v2563_v26  ;;  %v1008_v1 = vpop.f32.mrb[47].mxu0  ;;  %p2263_p0 = scmp.ne.s32.totalorder %s1532_s29, %s2262_s30  ;;  %p2268_p2 = scmp.lt.s32.totalorder %s2262_s30, %s2262_s30 }
 0x2be   :  { %v2151_v2 = vpop.eup %2150  ;;  %v1009_v3 = vadd.f32 %v2563_v26, %v1008_v1 }
 0x2bf   :  { %v2153_v4 = vpop.eup %2152  ;;  %1943 = vmatprep.mubr.msk.f32.mxu1 %vm1137_vm7, %v2151_v2  ;;  %p2269_p3 = por %p2268_p2, %p2267_p1 }
 0x2c0   :  { %2162 = vtanh.f32 %v1009_v3  ;;  %v1907_v5 = vpop.f32.mrb[48].mxu0  ;;  %1944 = vmatmul.mubr.msk.f32.gmra.mrb[40].mxu1 %vm1137_vm7, %v2153_v4 }
 0x2c1   :  { %2164 = vtanh.f32 %v1014_v0  ;;  %v1024_v6 = vadd.f32 %v1907_v5, %v2563_v26  ;;  %v1018_v7 = vpop.f32.mrb[49].mxu0  ;;  %p2270_p4 = pnand %p2269_p3, %p2263_p0 }
 0x2c2   :  { %v2155_v8 = vpop.eup %2154  ;;  %v1019_v9 = vadd.f32 %v2563_v26, %v1018_v7 }
 0x2c3   :  { %v2157_v10 = vpop.eup %2156  ;;  %1946 = vmatprep.mubr.msk.f32.mxu1 %vm1137_vm7, %v2155_v8 }
 0x2c4   :  { %2166 = vtanh.f32 %v1019_v9  ;;  %v1910_v11 = vpop.f32.mrb[50].mxu0  ;;  %1947 = vmatmul.mubr.msk.f32.gmra.mrb[42].mxu1 %vm1137_vm7, %v2157_v10 }
 0x2c5   :  { %2168 = vtanh.f32 %v1024_v6  ;;  %v1034_v12 = vadd.f32 %v1910_v11, %v2563_v26  ;;  %v1028_v13 = vpop.f32.mrb[51].mxu0 }
 0x2c6   :  { %v2159_v14 = vpop.eup %2158  ;;  %v1029_v15 = vadd.f32 %v2563_v26, %v1028_v13 }
 0x2c7   :  { %v2161_v16 = vpop.eup %2160  ;;  %1949 = vmatprep.mubr.msk.f32.mxu1 %vm1137_vm7, %v2159_v14 }
 0x2c8   :  { %2170 = vtanh.f32 %v1029_v15  ;;  %v1913_v17 = vpop.f32.mrb[52].mxu0  ;;  %1950 = vmatmul.mubr.msk.f32.gmra.mrb[44].mxu1 %vm1137_vm7, %v2161_v16 }
 0x2c9   :  { %2172 = vtanh.f32 %v1034_v12  ;;  %v1044_v18 = vadd.f32 %v1913_v17, %v2563_v26  ;;  %v1038_v19 = vpop.f32.mrb[53].mxu0 }
 0x2ca   :  { %v2163_v20 = vpop.eup %2162  ;;  %v1039_v21 = vadd.f32 %v2563_v26, %v1038_v19 }
 0x2cb   :  { %v2165_v23 = vpop.eup %2164  ;;  %1952 = vmatprep.mubr.msk.f32.mxu1 %vm1137_vm7, %v2163_v20 }
 0x2cc   :  { %2174 = vtanh.f32 %v1039_v21  ;;  %v1916_v24 = vpop.f32.mrb[54].mxu0  ;;  %1953 = vmatmul.mubr.msk.f32.gmra.mrb[46].mxu1 %vm1137_vm7, %v2165_v23 }
 0x2cd   :  { %2176 = vtanh.f32 %v1044_v18  ;;  %v1054_v56 = vadd.f32 %v1916_v24, %v2563_v26  ;;  %v1048_v25 = vpop.f32.mrb[55].mxu0 }
 0x2ce   :  { %v2167_v27 = vpop.eup %2166  ;;  %v1049_v28 = vadd.f32 %v2563_v26, %v1048_v25 }
 0x2cf   :  { %v2169_v29 = vpop.eup %2168  ;;  %1955 = vmatprep.mubr.msk.f32.mxu1 %vm1137_vm7, %v2167_v27 }
 0x2d0   :  { %2178 = vtanh.f32 %v1049_v28  ;;  %v1919_v30 = vpop.f32.mrb[56].mxu0  ;;  %1956 = vmatmul.mubr.msk.f32.gmra.mrb[48].mxu1 %vm1137_vm7, %v2169_v29 }
 0x2d1   :  { %2180 = vtanh.f32 %v1054_v56  ;;  %v1064_v31 = vadd.f32 %v1919_v30, %v2563_v26  ;;  %v1058_v32 = vpop.f32.mrb[57].mxu0 }
 0x2d2   :  { %v2171_v33 = vpop.eup %2170  ;;  %v1059_v34 = vadd.f32 %v2563_v26, %v1058_v32 }
 0x2d3   :  { %v2173_v35 = vpop.eup %2172  ;;  %1958 = vmatprep.mubr.msk.f32.mxu1 %vm1137_vm7, %v2171_v33 }
 0x2d4   :  { %2182 = vtanh.f32 %v1059_v34  ;;  %v1922_v36 = vpop.f32.mrb[58].mxu0  ;;  %1959 = vmatmul.mubr.msk.f32.gmra.mrb[50].mxu1 %vm1137_vm7, %v2173_v35 }
 0x2d5   :  { %2184 = vtanh.f32 %v1064_v31  ;;  %v1074_v37 = vadd.f32 %v1922_v36, %v2563_v26  ;;  %v1068_v38 = vpop.f32.mrb[59].mxu0 }
 0x2d6   :  { %v2175_v39 = vpop.eup %2174  ;;  %v1069_v40 = vadd.f32 %v2563_v26, %v1068_v38 }
 0x2d7   :  { %v2177_v41 = vpop.eup %2176  ;;  %1961 = vmatprep.mubr.msk.f32.mxu1 %vm1137_vm7, %v2175_v39 }
 0x2d8   :  { %2186 = vtanh.f32 %v1069_v40  ;;  %v1925_v42 = vpop.f32.mrb[60].mxu0  ;;  %1962 = vmatmul.mubr.msk.f32.gmra.mrb[52].mxu1 %vm1137_vm7, %v2177_v41 }
 0x2d9   :  { %2188 = vtanh.f32 %v1074_v37  ;;  %v1084_v43 = vadd.f32 %v1925_v42, %v2563_v26  ;;  %v1078_v44 = vpop.f32.mrb[61].mxu0 }
 0x2da   :  { %v2179_v45 = vpop.eup %2178  ;;  %v1079_v46 = vadd.f32 %v2563_v26, %v1078_v44 }
 0x2db   :  { %v2181_v47 = vpop.eup %2180  ;;  %1964 = vmatprep.mubr.msk.f32.mxu1 %vm1137_vm7, %v2179_v45 }
 0x2dc   :  { %2190 = vtanh.f32 %v1079_v46  ;;  %v1928_v48 = vpop.f32.mrb[62].mxu0  ;;  %1965 = vmatmul.mubr.msk.f32.gmra.mrb[54].mxu1 %vm1137_vm7, %v2181_v47 }
 0x2dd   :  { %2192 = vtanh.f32 %v1084_v43  ;;  %v1094_v49 = vadd.f32 %v1928_v48, %v2563_v26  ;;  %v1088_v50 = vpop.f32.mrb[63].mxu0 }
 0x2de   :  { %v2183_v51 = vpop.eup %2182  ;;  %v1089_v52 = vadd.f32 %v2563_v26, %v1088_v50 }
 0x2df   :  { %v2185_v53 = vpop.eup %2184  ;;  %1967 = vmatprep.mubr.msk.f32.mxu1 %vm1137_vm7, %v2183_v51 }
 0x2e0   :  { %2194 = vtanh.f32 %v1089_v52  ;;  %1968 = vmatmul.mubr.msk.f32.gmra.mrb[56].mxu1 %vm1137_vm7, %v2185_v53 }
 0x2e1   :  { %2196 = vtanh.f32 %v1094_v49 }
 0x2e2   :  { %v2187_v54 = vpop.eup %2186 }
 0x2e3   :  { %v2189_v22 = vpop.eup %2188  ;;  %1970 = vmatprep.mubr.msk.f32.mxu1 %vm1137_vm7, %v2187_v54 }
 0x2e4   :  { %1971 = vmatmul.mubr.msk.f32.gmra.mrb[58].mxu1 %vm1137_vm7, %v2189_v22 }
 0x2e6   :  { %v2191_v55 = vpop.eup %2190 }
 0x2e7   :  { %v2193_v57 = vpop.eup %2192  ;;  %1973 = vmatprep.mubr.msk.f32.mxu1 %vm1137_vm7, %v2191_v55 }
 0x2e8   :  { %1974 = vmatmul.mubr.msk.f32.gmra.mrb[60].mxu1 %vm1137_vm7, %v2193_v57 }
 0x2ea   :  { %v2195_v26 = vpop.eup %2194 }
 0x2eb   :  { %v2197_v58 = vpop.eup %2196  ;;  %1976 = vmatprep.mubr.msk.f32.mxu1 %vm1137_vm7, %v2195_v26 }
 0x2ec   :  { %1977 = vmatmul.mubr.msk.f32.gmra.mrb[62].mxu1 %vm1137_vm7, %v2197_v58 }
 0x383   :  { %v1933_v60 = vpop.f32.mrb[32].mxu1 }
 0x384   :  { %v1309_v61 = vadd.f32 %v1933_v60, %v2632_v59  ;;  %v1303_v62 = vpop.f32.mrb[33].mxu1 }
 0x385   :  { %v1304_v63 = vadd.f32 %v2632_v59, %v1303_v62 }
 0x386   :  { %2198 = vtanh.f32 %v1309_v61 }
 0x387   :  { %2200 = vtanh.f32 %v1304_v63  ;;  %v1936_v0 = vpop.f32.mrb[34].mxu1 }
 0x388   :  { %v1319_v1 = vadd.f32 %v1936_v0, %v2632_v59  ;;  %v1313_v2 = vpop.f32.mrb[35].mxu1 }
 0x389   :  { %v1314_v3 = vadd.f32 %v2632_v59, %v1313_v2 }
 0x38a   :  { %2202 = vtanh.f32 %v1319_v1 }
 0x38b   :  { %2204 = vtanh.f32 %v1314_v3  ;;  %v1939_v4 = vpop.f32.mrb[36].mxu1 }
 0x38c   :  { %v1329_v5 = vadd.f32 %v1939_v4, %v2632_v59  ;;  %v1323_v6 = vpop.f32.mrb[37].mxu1 }
 0x38d   :  { %v1324_v7 = vadd.f32 %v2632_v59, %v1323_v6 }
 0x38e   :  { %2206 = vtanh.f32 %v1329_v5 }
 0x38f   :  { %2208 = vtanh.f32 %v1324_v7  ;;  %v1942_v8 = vpop.f32.mrb[38].mxu1 }
 0x390   :  { %v2199_v9 = vpop.eup %2198  ;;  %v1339_v10 = vadd.f32 %v1942_v8, %v2632_v59  ;;  %v1333_v11 = vpop.f32.mrb[39].mxu1 }
 0x391   :  { %v2201_v12 = vpop.eup %2200  ;;  %1495 = vst [vmem:[#allocation2 + $0x8] sm:$0xff] %v2199_v9  ;;  %v1334_v13 = vadd.f32 %v2632_v59, %v1333_v11 }
 0x392   :  { %1494 = vst [vmem:[#allocation2] sm:$0xff] %v2201_v12  ;;  %2210 = vtanh.f32 %v1339_v10 }
 0x393   :  { %2212 = vtanh.f32 %v1334_v13  ;;  %v1945_v14 = vpop.f32.mrb[40].mxu1 }
 0x394   :  { %v2203_v15 = vpop.eup %2202  ;;  %v1349_v16 = vadd.f32 %v1945_v14, %v2632_v59  ;;  %v1343_v17 = vpop.f32.mrb[41].mxu1 }
 0x395   :  { %v2205_v18 = vpop.eup %2204  ;;  %1497 = vst [vmem:[#allocation2 + $0x18] sm:$0xff] %v2203_v15  ;;  %v1344_v19 = vadd.f32 %v2632_v59, %v1343_v17 }
 0x396   :  { %1496 = vst [vmem:[#allocation2 + $0x10] sm:$0xff] %v2205_v18  ;;  %2214 = vtanh.f32 %v1349_v16 }
 0x397   :  { %2216 = vtanh.f32 %v1344_v19  ;;  %v1948_v20 = vpop.f32.mrb[42].mxu1 }
 0x398   :  { %v2207_v21 = vpop.eup %2206  ;;  %v1359_v23 = vadd.f32 %v1948_v20, %v2632_v59  ;;  %v1353_v24 = vpop.f32.mrb[43].mxu1 }
 0x399   :  { %v2209_v56 = vpop.eup %2208  ;;  %1499 = vst [vmem:[#allocation2 + $0x28] sm:$0xff] %v2207_v21  ;;  %v1354_v25 = vadd.f32 %v2632_v59, %v1353_v24 }
 0x39a   :  { %1498 = vst [vmem:[#allocation2 + $0x20] sm:$0xff] %v2209_v56  ;;  %2218 = vtanh.f32 %v1359_v23 }
 0x39b   :  { %2220 = vtanh.f32 %v1354_v25  ;;  %v1951_v27 = vpop.f32.mrb[44].mxu1 }
 0x39c   :  { %v2211_v28 = vpop.eup %2210  ;;  %v1369_v29 = vadd.f32 %v1951_v27, %v2632_v59  ;;  %v1363_v30 = vpop.f32.mrb[45].mxu1 }
 0x39d   :  { %v2213_v31 = vpop.eup %2212  ;;  %1501 = vst [vmem:[#allocation2 + $0x38] sm:$0xff] %v2211_v28  ;;  %v1364_v32 = vadd.f32 %v2632_v59, %v1363_v30 }
 0x39e   :  { %1500 = vst [vmem:[#allocation2 + $0x30] sm:$0xff] %v2213_v31  ;;  %2222 = vtanh.f32 %v1369_v29 }
 0x39f   :  { %2224 = vtanh.f32 %v1364_v32  ;;  %v1954_v33 = vpop.f32.mrb[46].mxu1 }
 0x3a0   :  { %v2215_v34 = vpop.eup %2214  ;;  %v1379_v35 = vadd.f32 %v1954_v33, %v2632_v59  ;;  %v1373_v36 = vpop.f32.mrb[47].mxu1 }
 0x3a1   :  { %v2217_v37 = vpop.eup %2216  ;;  %1503 = vst [vmem:[#allocation2 + $0x48] sm:$0xff] %v2215_v34  ;;  %v1374_v38 = vadd.f32 %v2632_v59, %v1373_v36 }
 0x3a2   :  { %1502 = vst [vmem:[#allocation2 + $0x40] sm:$0xff] %v2217_v37  ;;  %2226 = vtanh.f32 %v1379_v35 }
 0x3a3   :  { %2228 = vtanh.f32 %v1374_v38  ;;  %v1957_v39 = vpop.f32.mrb[48].mxu1 }
 0x3a4   :  { %v2219_v40 = vpop.eup %2218  ;;  %v1389_v41 = vadd.f32 %v1957_v39, %v2632_v59  ;;  %v1383_v42 = vpop.f32.mrb[49].mxu1 }
 0x3a5   :  { %v2221_v43 = vpop.eup %2220  ;;  %1505 = vst [vmem:[#allocation2 + $0x58] sm:$0xff] %v2219_v40  ;;  %v1384_v44 = vadd.f32 %v2632_v59, %v1383_v42 }
 0x3a6   :  { %1504 = vst [vmem:[#allocation2 + $0x50] sm:$0xff] %v2221_v43  ;;  %2230 = vtanh.f32 %v1389_v41 }
 0x3a7   :  { %2232 = vtanh.f32 %v1384_v44  ;;  %v1960_v45 = vpop.f32.mrb[50].mxu1 }
 0x3a8   :  { %v2223_v46 = vpop.eup %2222  ;;  %v1399_v47 = vadd.f32 %v1960_v45, %v2632_v59  ;;  %v1393_v48 = vpop.f32.mrb[51].mxu1 }
 0x3a9   :  { %v2225_v49 = vpop.eup %2224  ;;  %1507 = vst [vmem:[#allocation2 + $0x68] sm:$0xff] %v2223_v46  ;;  %v1394_v50 = vadd.f32 %v2632_v59, %v1393_v48 }
 0x3aa   :  { %1506 = vst [vmem:[#allocation2 + $0x60] sm:$0xff] %v2225_v49  ;;  %2234 = vtanh.f32 %v1399_v47 }
 0x3ab   :  { %2236 = vtanh.f32 %v1394_v50  ;;  %v1963_v51 = vpop.f32.mrb[52].mxu1 }
 0x3ac   :  { %v2227_v52 = vpop.eup %2226  ;;  %v1409_v53 = vadd.f32 %v1963_v51, %v2632_v59  ;;  %v1403_v54 = vpop.f32.mrb[53].mxu1 }
 0x3ad   :  { %v2229_v22 = vpop.eup %2228  ;;  %1509 = vst [vmem:[#allocation2 + $0x78] sm:$0xff] %v2227_v52  ;;  %v1404_v55 = vadd.f32 %v2632_v59, %v1403_v54 }
 0x3ae   :  { %1508 = vst [vmem:[#allocation2 + $0x70] sm:$0xff] %v2229_v22  ;;  %2238 = vtanh.f32 %v1409_v53 }
 0x3af   :  { %2240 = vtanh.f32 %v1404_v55  ;;  %v1966_v57 = vpop.f32.mrb[54].mxu1 }
 0x3b0   :  { %v2231_v26 = vpop.eup %2230  ;;  %v1419_v58 = vadd.f32 %v1966_v57, %v2632_v59  ;;  %v1413_v60 = vpop.f32.mrb[55].mxu1 }
 0x3b1   :  { %v2233_v61 = vpop.eup %2232  ;;  %1511 = vst [vmem:[#allocation2 + $0x88] sm:$0xff] %v2231_v26  ;;  %v1414_v62 = vadd.f32 %v2632_v59, %v1413_v60 }
 0x3b2   :  { %1510 = vst [vmem:[#allocation2 + $0x80] sm:$0xff] %v2233_v61  ;;  %2242 = vtanh.f32 %v1419_v58 }
 0x3b3   :  { %2244 = vtanh.f32 %v1414_v62  ;;  %v1969_v63 = vpop.f32.mrb[56].mxu1 }
 0x3b4   :  { %v2235_v0 = vpop.eup %2234  ;;  %v1429_v1 = vadd.f32 %v1969_v63, %v2632_v59  ;;  %v1423_v2 = vpop.f32.mrb[57].mxu1 }
 0x3b5   :  { %v2237_v3 = vpop.eup %2236  ;;  %1513 = vst [vmem:[#allocation2 + $0x98] sm:$0xff] %v2235_v0  ;;  %v1424_v4 = vadd.f32 %v2632_v59, %v1423_v2 }
 0x3b6   :  { %1512 = vst [vmem:[#allocation2 + $0x90] sm:$0xff] %v2237_v3  ;;  %2246 = vtanh.f32 %v1429_v1 }
 0x3b7   :  { %2248 = vtanh.f32 %v1424_v4  ;;  %v1972_v5 = vpop.f32.mrb[58].mxu1 }
 0x3b8   :  { %v2239_v6 = vpop.eup %2238  ;;  %v1439_v7 = vadd.f32 %v1972_v5, %v2632_v59  ;;  %v1433_v8 = vpop.f32.mrb[59].mxu1 }
 0x3b9   :  { %v2241_v9 = vpop.eup %2240  ;;  %1515 = vst [vmem:[#allocation2 + $0xa8] sm:$0xff] %v2239_v6  ;;  %v1434_v10 = vadd.f32 %v2632_v59, %v1433_v8 }
 0x3ba   :  { %1514 = vst [vmem:[#allocation2 + $0xa0] sm:$0xff] %v2241_v9  ;;  %2250 = vtanh.f32 %v1439_v7 }
 0x3bb   :  { %2252 = vtanh.f32 %v1434_v10  ;;  %v1975_v11 = vpop.f32.mrb[60].mxu1 }
 0x3bc   :  { %v2243_v12 = vpop.eup %2242  ;;  %v1449_v13 = vadd.f32 %v1975_v11, %v2632_v59  ;;  %v1443_v14 = vpop.f32.mrb[61].mxu1 }
 0x3bd   :  { %v2245_v15 = vpop.eup %2244  ;;  %1517 = vst [vmem:[#allocation2 + $0xb8] sm:$0xff] %v2243_v12  ;;  %v1444_v16 = vadd.f32 %v2632_v59, %v1443_v14 }
 0x3be   :  { %1516 = vst [vmem:[#allocation2 + $0xb0] sm:$0xff] %v2245_v15  ;;  %2254 = vtanh.f32 %v1449_v13 }
 0x3bf   :  { %2256 = vtanh.f32 %v1444_v16  ;;  %v1978_v17 = vpop.f32.mrb[62].mxu1 }
 0x3c0   :  { %v2247_v18 = vpop.eup %2246  ;;  %v1459_v19 = vadd.f32 %v1978_v17, %v2632_v59  ;;  %v1453_v20 = vpop.f32.mrb[63].mxu1 }
 0x3c1   :  { %v2249_v21 = vpop.eup %2248  ;;  %1519 = vst [vmem:[#allocation2 + $0xc8] sm:$0xff] %v2247_v18  ;;  %v1454_v23 = vadd.f32 %v2632_v59, %v1453_v20 }
 0x3c2   :  { %1518 = vst [vmem:[#allocation2 + $0xc0] sm:$0xff] %v2249_v21  ;;  %2258 = vtanh.f32 %v1459_v19 }
 0x3c3   :  { %2260 = vtanh.f32 %v1454_v23 }
 0x3c4   :  { %v2251_v24 = vpop.eup %2250 }
 0x3c5   :  { %v2253_v56 = vpop.eup %2252  ;;  %1521 = vst [vmem:[#allocation2 + $0xd8] sm:$0xff] %v2251_v24 }
 0x3c6   :  { %1520 = vst [vmem:[#allocation2 + $0xd0] sm:$0xff] %v2253_v56 }
 0x3c8   :  { %v2255_v25 = vpop.eup %2254 }
 0x3c9   :  { %v2257_v27 = vpop.eup %2256  ;;  %1523 = vst [vmem:[#allocation2 + $0xe8] sm:$0xff] %v2255_v25 }
 0x3ca   :  { %1522 = vst [vmem:[#allocation2 + $0xe0] sm:$0xff] %v2257_v27 }
 0x3cc   :  { %v2259_v28 = vpop.eup %2258 }
 0x3cd   :  { %v2261_v29 = vpop.eup %2260  ;;  %1525 = vst [vmem:[#allocation2 + $0xf8] sm:$0xff] %v2259_v28 }
 0x3ce   :  { %1524 = vst [vmem:[#allocation2 + $0xf0] sm:$0xff] %v2261_v29 }
 0x3cf   :  { %2273 = shalt.err (!%p2270_p4)
}
 0x3d0   :  { %s2274_s12 = scalar_lea.hbm %s2687_s9, 4096 }
 0x3d1   :  { %p2275_p5 = scmp.ne.s32.totalorder %s2687_s9, %s2274_s12  ;;  %p2278_p6 = scmp.lt.u32.totalorder %s2274_s12, %s2687_s9 }
 0x3d3   :  { %p2280_p7 = pnand %p2278_p6, %p2275_p5 }
 0x3d5   :  { %2283 = shalt.err (!%p2280_p7)
}
 0x3d6   :  { %s2288_s1 = smov 128   ;;  %s2289_s17 = smov 8  }
 0x3d7   :  { %1537 = dma.vmem_to_hbm [thread:$0]  %s1532_s29, 4096, %s2687_s9, [#allocation3], %s2288_s1, %s2288_s1, %s2289_s17  }
 0x3d8   :  { %2284 = dma.done.wait [#allocation3], 4096  }
 0x3d9   :  { %2285 = vsyncadd [#allocation3], 4294963200 }
 0x3da   :  { %1541 = vsyncpa [#allocation3], 1 }

</bundles_post_ra>
